<compile_context>
chip_gen: v5e
topology: v5e:2x2
jax: 0.10.0
libtpu: 0.0.40
codegen_flags: <defaults>
</compile_context>

<pallas_src>
import functools

import jax
import jax.numpy as jnp
from jax.experimental import pallas as pl
from jax.experimental.pallas import tpu as pltpu


def _w_network_kernel(dims, w_offs, b_offs, compute_dtype,
                      x_ref, w_ref, b_ref, o_ref):
    """One batch-tile of the MLP forward, batch on the 128-lane axis.

    x_ref : (tile_b, D)            untransposed input rows
    w_ref : (RW, CW)               packed weights (output-layer weight stored
                                   as an (H_last, 1) column)
    b_ref : (RB, 1)                packed biases (column vectors)
    o_ref : (1, tile_b)            lane-dense output slab
    """
    n_layers = len(dims)

    def load_w(i, fo, fi):
        return w_ref[pl.ds(w_offs[i], fo), pl.ds(0, fi)]

    def load_b(i, fo):
        return b_ref[pl.ds(b_offs[i], fo), :]

    # --- layer 0: contract over D directly against the untransposed x tile ---
    fo0, fi0 = dims[0]
    w0 = load_w(0, fo0, fi0).astype(compute_dtype)          # (H0, D)
    b0 = load_b(0, fo0)                                     # (H0, 1) f32
    x = x_ref[...].astype(compute_dtype)                    # (tile_b, D)
    acc = jax.lax.dot_general(w0, x, (((1,), (1,)), ((), ())),
                              preferred_element_type=jnp.float32)
    h = jnp.tanh((acc + b0).astype(compute_dtype))          # (H0, tile_b)

    # --- hidden tanh layers: h <- tanh(W @ h + b), N = tile_b on the MXU ----
    for li in range(1, n_layers - 1):
        fo, fi = dims[li]
        w = load_w(li, fo, fi).astype(compute_dtype)        # (fo, fi)
        b = load_b(li, fo)                                  # (fo, 1) f32
        acc = jnp.dot(w, h, preferred_element_type=jnp.float32)
        h = jnp.tanh((acc + b).astype(compute_dtype))       # (fo, tile_b)

    # --- output layer (out_features == 1): VPU multiply + sublane reduction --
    h_last = dims[-1][1]
    w_out = load_w(n_layers - 1, h_last, 1)                 # (H_last, 1) f32
    b_out = load_b(n_layers - 1, 1)                         # (1, 1) f32
    z = jnp.sum(w_out * h.astype(jnp.float32), axis=0, keepdims=True) + b_out

    # Written literally as in the torch module: log(1 + exp(z)).
    # TODO(synk): if the intent is F.softplus, switch to a thresholded
    # log1p(exp) form to avoid +inf for z >~ 88 in float32.
    o_ref[...] = jnp.log(1.0 + jnp.exp(z)).astype(o_ref.dtype)


def _pack_params(params):
    """Pack torch-layout (w, b) pairs into two small 2-D f32 slabs.

    Tanh layer i : W_i at rows [w_offs[i], +fo) x cols [0, fi) of w_packed,
                   b_i at rows [b_offs[i], +fo) x col 0 of b_packed.
    Output layer : its (1, H_last) weight is stored as an (H_last, 1) column
                   so the kernel uses it directly in the VPU+XLU reduction.
    Row offsets are padded to multiples of 8 (sublane alignment).
    """
    dims = tuple((int(w.shape[0]), int(w.shape[1])) for w, _ in params)
    n = len(params)

    w_shapes = [(fo, fi) for fo, fi in dims[:-1]] + [(dims[-1][1], 1)]
    b_shapes = [(fo, 1) for fo, _ in dims[:-1]] + [(1, 1)]

    def pad8(k):
        return -(-k // 8) * 8

    w_offs, r = [], 0
    for fo, _ in w_shapes:
        w_offs.append(r)
        r += pad8(fo)
    RW = r
    CW = max(fi for _, fi in w_shapes)

    b_offs, r = [], 0
    for fo, _ in b_shapes:
        b_offs.append(r)
        r += pad8(fo)
    RB = r

    w_packed = jnp.zeros((RW, CW), jnp.float32)
    b_packed = jnp.zeros((RB, 1), jnp.float32)
    for i, (w, b) in enumerate(params):
        if i < n - 1:
            fo, fi = dims[i]
            w_packed = w_packed.at[w_offs[i]:w_offs[i] + fo, :fi].set(
                w.astype(jnp.float32))
            b_packed = b_packed.at[b_offs[i]:b_offs[i] + fo, 0].set(
                b.astype(jnp.float32))
        else:
            h_last = dims[i][1]
            w_packed = w_packed.at[w_offs[i]:w_offs[i] + h_last, 0].set(
                w.reshape(h_last).astype(jnp.float32))
            b_packed = b_packed.at[b_offs[i]:b_offs[i] + 1, 0].set(
                b.reshape(1).astype(jnp.float32))
    return dims, tuple(w_offs), tuple(b_offs), w_packed, b_packed


def w_network_forward(x, params, *, tile_b=None, compute_dtype=jnp.float32,
                      x_buffer_count=None):
    """Runs the W_network forward pass with a Pallas TPU kernel.

    x:      (B, D) float32.
    params: list of (w, b) pairs in PyTorch nn.Linear layout
            (w: (out_features, in_features), b: (out_features,)); the last pair
            is the output layer with out_features == 1.
    compute_dtype: jnp.bfloat16 is optionally allowed on v6e/v7x (EUP-bound
            tanh); f32 accumulation on the MXU is kept. Default float32.
    x_buffer_count: set to 3 on v5e only if profiling shows exposed x DMA.
    """
    B, D = x.shape
    n_layers = len(params)
    assert n_layers >= 2, "need at least input layer + output layer"
    assert params[-1][0].shape[0] == 1, "output layer must have out_features == 1"

    dims, w_offs, b_offs, w_packed, b_packed = _pack_params(params)

    # --- batch tile selection -------------------------------------------------
    # Big tiles amortize the ~0.35us per-grid-step overhead; tile count is
    # rounded up to an even number so both v7x TensorCores get work on the
    # single "parallel" grid axis.  At tile_b=8192 the (tile_b, D) x buffers
    # plus (H, tile_b) activations stay far below the default scoped VMEM
    # limit on v5e/v6e/v7x.
    if tile_b is None:
        max_tile = 8192
        n_target = max(2, -(-B // max_tile))
        n_target += n_target % 2                       # even -> both v7x TCs busy
        per = -(-B // n_target)
        tile_b = min(max_tile, max(128, -(-per // 128) * 128))
    assert tile_b % 128 == 0, "tile_b must be a multiple of the 128-lane width"
    n_tiles = -(-B // tile_b)

    RW, CW = int(w_packed.shape[0]), int(w_packed.shape[1])
    RB = int(b_packed.shape[0])

    # x spec: untransposed, unpadded; the ragged last tile overhangs B and is
    # masked on the output write (all ops are lane-independent, so the pad
    # lanes never touch valid results).
    if x_buffer_count is None:
        x_spec = pl.BlockSpec((tile_b, D), lambda i: (i, 0))
    else:
        x_spec = pl.BlockSpec((tile_b, D), lambda i: (i, 0),
                              pipeline_mode=pl.Buffered(x_buffer_count))

    # Advisory cost estimate so XLA schedules neighbors around this call sanely.
    flops = 2 * n_tiles * tile_b * sum(fo * fi for fo, fi in dims)
    transcendentals = n_tiles * tile_b * (sum(fo for fo, _ in dims[:-1]) + 2)
    bytes_accessed = 4 * (B * D + B + int(w_packed.size) + int(b_packed.size))
    cost = pl.CostEstimate(flops=flops, transcendentals=transcendentals,
                           bytes_accessed=bytes_accessed)

    out = pl.pallas_call(
        functools.partial(_w_network_kernel, dims, w_offs, b_offs, compute_dtype),
        out_shape=jax.ShapeDtypeStruct((1, B), jnp.float32),
        grid_spec=pltpu.PrefetchScalarGridSpec(
            num_scalar_prefetch=0,
            grid=(n_tiles,),
            in_specs=[
                x_spec,
                # Weights/biases: two small resident slabs, constant index_map
                # (fetched once, no per-step DMA bookkeeping for 6+ operands).
                pl.BlockSpec((RW, CW), lambda i: (0, 0)),
                pl.BlockSpec((RB, 1), lambda i: (0, 0)),
            ],
            # Lane-dense output slab: last block dim is tile_b (multiple of 128).
            out_specs=pl.BlockSpec((1, tile_b), lambda i: (0, i)),
        ),
        compiler_params=pltpu.CompilerParams(
            dimension_semantics=("parallel",)),
        cost_estimate=cost,
    )(x.astype(jnp.float32), w_packed, b_packed)

    # Return in the module's (B, 1) shape.
    return out.reshape(B, 1)


def init_params(key, input_dim, hidden_layers):
    """nn.Linear-style init: U(-1/sqrt(fan_in), 1/sqrt(fan_in)) for w and b."""
    dims = [input_dim] + list(hidden_layers) + [1]
    keys = jax.random.split(key, len(dims) - 1)
    params = []
    for k, fan_in, fan_out in zip(keys, dims[:-1], dims[1:]):
        bound = 1.0 / (float(fan_in) ** 0.5)
        kw, kb = jax.random.split(k)
        w = jax.random.uniform(kw, (fan_out, fan_in), jnp.float32, -bound, bound)
        b = jax.random.uniform(kb, (fan_out,), jnp.float32, -bound, bound)
        params.append((w, b))
    return params


def reference_forward(x, params):
    """Pure-JAX reference with the module's exact math."""
    h = x
    for w, b in params[:-1]:
        h = jnp.tanh(h @ w.T + b)
    w_out, b_out = params[-1]
    z = jnp.sum(h * w_out, axis=-1, keepdims=True) + b_out
    return jnp.log(1.0 + jnp.exp(z))


if __name__ == "__main__":
    key = jax.random.PRNGKey(0)
    k_x, k_p = jax.random.split(key)

    input_dim = 16
    hidden_layers = [32, 32]
    batch = 200  # deliberately not a multiple of 128: exercises the ragged tail

    x = jax.random.normal(k_x, (batch, input_dim), jnp.float32)
    params = init_params(k_p, input_dim, hidden_layers)

    out = jax.block_until_ready(w_network_forward(x, params))
    ref = reference_forward(x, params)

    assert out.shape == (batch, 1)
    assert jnp.allclose(out, ref, atol=1e-5, rtol=1e-5), "mismatch vs reference"

    print("KERNEL_OK")
</pallas_src>

<mosaic_0001>
module attributes {stable_mosaic.version = 11 : i64} {
  func.func @_w_network_kernel(%arg0: i32, %arg1: memref<128x16xf32, #tpu.memory_space<vmem>>, %arg2: memref<96x32xf32, #tpu.memory_space<vmem>>, %arg3: memref<72x1xf32, #tpu.memory_space<vmem>>, %arg4: memref<1x128xf32, #tpu.memory_space<vmem>>) attributes {dimension_semantics = [#tpu.dimension_semantics<parallel>], iteration_bounds = array<i64: 2>, scalar_prefetch = 0 : i64, scratch_operands = 0 : i64, tpu.core_type = #tpu.core_type<tc>, window_params = [{transform_indices = @transform_0, window_bounds = array<i64: 128, 16>}, {pipeline_mode = #tpu.pipeline_mode<synchronous>, transform_indices = @transform_1, window_bounds = array<i64: 96, 32>}, {pipeline_mode = #tpu.pipeline_mode<synchronous>, transform_indices = @transform_2, window_bounds = array<i64: 72, 1>}, {transform_indices = @transform_3, window_bounds = array<i64: 1, 128>}]} {
    %c0 = arith.constant 0 : index
    %c0_0 = arith.constant 0 : index
    %0 = vector.load %arg2[%c0, %c0_0] : memref<96x32xf32, #tpu.memory_space<vmem>>, vector<32x16xf32>
    %c0_1 = arith.constant 0 : index
    %c0_2 = arith.constant 0 : index
    %1 = vector.load %arg3[%c0_1, %c0_2] : memref<72x1xf32, #tpu.memory_space<vmem>>, vector<32x1xf32>
    %c0_3 = arith.constant 0 : index
    %c0_4 = arith.constant 0 : index
    %2 = vector.load %arg1[%c0_3, %c0_4] : memref<128x16xf32, #tpu.memory_space<vmem>>, vector<128x16xf32>
    %cst = arith.constant dense<0.000000e+00> : vector<32x128xf32>
    %3 = tpu.matmul %0, %2, %cst {dimension_numbers = #tpu.dot_dimension_numbers<[1], [1], [0], [0], [0, 0, 1, 0], [], []>} : vector<32x16xf32>, vector<128x16xf32>, vector<32x128xf32> -> vector<32x128xf32>
    %4 = vector.broadcast %1 : vector<32x1xf32> to vector<32x128xf32>
    %5 = arith.addf %3, %4 : vector<32x128xf32>
    %6 = math.tanh %5 : vector<32x128xf32>
    %c32 = arith.constant 32 : index
    %c0_5 = arith.constant 0 : index
    %7 = vector.load %arg2[%c32, %c0_5] : memref<96x32xf32, #tpu.memory_space<vmem>>, vector<32x32xf32>
    %c32_6 = arith.constant 32 : index
    %c0_7 = arith.constant 0 : index
    %8 = vector.load %arg3[%c32_6, %c0_7] : memref<72x1xf32, #tpu.memory_space<vmem>>, vector<32x1xf32>
    %cst_8 = arith.constant dense<0.000000e+00> : vector<32x128xf32>
    %9 = tpu.matmul %7, %6, %cst_8 {dimension_numbers = #tpu.dot_dimension_numbers<[1], [0], [0], [1], [0, 0, 1, 1], [], []>} : vector<32x32xf32>, vector<32x128xf32>, vector<32x128xf32> -> vector<32x128xf32>
    %10 = vector.broadcast %8 : vector<32x1xf32> to vector<32x128xf32>
    %11 = arith.addf %9, %10 : vector<32x128xf32>
    %12 = math.tanh %11 : vector<32x128xf32>
    %c64 = arith.constant 64 : index
    %c0_9 = arith.constant 0 : index
    %13 = vector.load %arg2[%c64, %c0_9] : memref<96x32xf32, #tpu.memory_space<vmem>>, vector<32x1xf32>
    %c64_10 = arith.constant 64 : index
    %c0_11 = arith.constant 0 : index
    %14 = vector.load %arg3[%c64_10, %c0_11] : memref<72x1xf32, #tpu.memory_space<vmem>>, vector<1x1xf32>
    %15 = vector.broadcast %13 : vector<32x1xf32> to vector<32x128xf32>
    %16 = arith.mulf %15, %12 : vector<32x128xf32>
    %cst_12 = arith.constant dense<0.000000e+00> : vector<128xf32>
    %17 = vector.multi_reduction <add>, %16, %cst_12 [0] : vector<32x128xf32> to vector<128xf32>
    %18 = vector.shape_cast %17 : vector<128xf32> to vector<1x128xf32>
    %19 = vector.broadcast %14 : vector<1x1xf32> to vector<1x128xf32>
    %20 = arith.addf %18, %19 : vector<1x128xf32>
    %21 = math.exp %20 : vector<1x128xf32>
    %cst_13 = arith.constant 1.000000e+00 : f32
    %22 = vector.broadcast %cst_13 : f32 to vector<1x128xf32>
    %23 = arith.addf %22, %21 : vector<1x128xf32>
    %24 = math.log %23 : vector<1x128xf32>
    %c0_14 = arith.constant 0 : index
    %c0_15 = arith.constant 0 : index
    %25 = vector.load %arg4[%c0_14, %c0_15] : memref<1x128xf32, #tpu.memory_space<vmem>>, vector<1x128xf32>
    tpu.vector_store %arg4[%c0_14, %c0_15], %24 {strides = array<i32>} : memref<1x128xf32, #tpu.memory_space<vmem>>, vector<1x128xf32>,
    return
  }
  func.func @transform_0(%arg0: i32) -> (i32, i32) {
    %c0_i32 = arith.constant 0 : i32
    %c0_i32_0 = arith.constant 0 : i32
    return %arg0, %c0_i32 : i32, i32
  }
  func.func @transform_1(%arg0: i32) -> (i32, i32) {
    %c0_i32 = arith.constant 0 : i32
    %c0_i32_0 = arith.constant 0 : i32
    %c0_i32_1 = arith.constant 0 : i32
    return %c0_i32, %c0_i32_0 : i32, i32
  }
  func.func @transform_2(%arg0: i32) -> (i32, i32) {
    %c0_i32 = arith.constant 0 : i32
    %c0_i32_0 = arith.constant 0 : i32
    %c0_i32_1 = arith.constant 0 : i32
    return %c0_i32, %c0_i32_0 : i32, i32
  }
  func.func @transform_3(%arg0: i32) -> (i32, i32) {
    %c0_i32 = arith.constant 0 : i32
    %c0_i32_0 = arith.constant 0 : i32
    return %c0_i32, %arg0 : i32, i32
  }
}

</mosaic_0001>

<bundles_post_ra>
// kernel: tpu_custom_call.1
= control target key start
LH: loop header
LB: loop body
LE: loop exit
PB: predicated region body
PF: predicated region fallthrough
CT: control target
= control target key end

     0   :  { %8 = vsyncpa [#allocation3], 0  ;;  %s949_s0 = inlined_call_operand.vmem [shape: f32[200,16], index: 0, kind: input, shape index: {}]   ;;  %s950_s1 = inlined_call_operand.vmem [shape: f32[96,32], index: 1, kind: input, shape index: {}]   ;;  %s951_s2 = inlined_call_operand.vmem [shape: f32[72,1], index: 2, kind: input, shape index: {}]   ;;  %s952_s3 = inlined_call_operand.hbm [shape: f32[1,200], index: 3, kind: output, shape index: {}]  }
   0x1   :  { %10 = vsyncpa [#allocation3 + $0x1], 0  ;;  %s732_s12 = smov 0   ;;  %s734_s13 = smov 0  }
   0x2   :  { %s736_s14 = smov 0   ;;  %s738_s15 = smov 0  }
   0x3 LB: > { %s753_s16 = sadd.s32 4294967295, %s709_s15   ;;  %s520_s17 = sadd.s32 4294967294, %s709_s15   ;;  %s709_s15 = sphi %s738_s15, %s958_s15   ;;  %s705_s14 = sphi %s736_s14, %s957_s14   ;;  %s701_s13 = sphi %s734_s13, %s956_s13   ;;  %s697_s12 = sphi %s732_s12, %s955_s12  }
   0x4   : > { %s757_s18 = sadd.s32 1, %s709_s15   ;;  %s91_s19 = sadd.s32 1, %s705_s14 }
   0x5   : > { %s88_s20 = ssub.s32 %s709_s15, %s757_s18  ;;  %p101_p0 = scmp.ne.s32.totalorder %s705_s14, %s701_s13 }
   0x6   : > { %p89_p1 = scmp.eq.s32.totalorder %s88_s20, 0  ;;  %p102_p2 = scmp.eq.s32.totalorder %s753_s16, 1 }
   0x7   : > { %p107_p3 = scmp.ne.s32.totalorder %s701_s13, %s697_s12  ;;  %p108_p4 = scmp.eq.s32.totalorder %s520_s17, 1 }
   0x8   : > { %s768_s21 = scalar_select %p89_p1, %s705_s14, %s91_s19  }
   0x9   : > { %p770_p5 = por %p102_p2, %p101_p0  ;;  %p774_p6 = por %p108_p4, %p107_p3 }
   0xa   : > { %p523_p7 = scmp.ge.s32.totalorder %s709_s15, 1  ;;  %p149_p8 = scmp.lt.s32.totalorder %s709_s15, 3 }
   0xc   : > { %p150_p9 = pnand %p523_p7, %p149_p8 }
   0xd   : > { %s524_s24 = sshll.u32 (!%p150_p9), %s753_s16, 4  ;;  %s461_s11 = scalar_lea.hbm (!%p150_p9), %s952_s3, %s753_s16 }
   0xe   : > { %153 = sbr.rel (%p150_p9) target bundleno = 442 (0x1ba), region = 32  ;;  %p181_p10 = scmp.lt.s32.totalorder (!%p150_p9), %s524_s24, 24 }
   0xf   : > { %s465_s20 = sshll.u32 (!%p150_p9), %s461_s11, 4  ;;  %s667_s16 = scalar_lea.hbm (!%p150_p9), %s952_s3, 2  ;;  %s466_s20 = int_to_ptr.hbm [resolvable:$true] %s465_s20 }
  0x13   : > { %s960_s24 = smov (!%p181_p10, %s524_s24), 24  ;;  %vm234_vm0 = vcmask 130048   ;;  %v197_v5 = vld [vmem:[%s951_s2 + $0x18] sm:$0xff]  ;;  %v711_v7 = vmov 0   ;;  %v196_v9 = vld [vmem:[%s951_s2 + $0x10] sm:$0xff]  ;;  %v195_v11 = vld [vmem:[%s951_s2 + $0x8] sm:$0xff] }
  0x14   : > { %s525_s25 = sshll.u32 %s960_s24, 3  ;;  %624 = vset.pattern.permute.xlu0 %v711_v7  ;;  %625 = vset.pattern.permute.xlu1 %v711_v7  ;;  %v334_v13 = vld [vmem:[%s951_s2 + $0x30] sm:$0xff]  ;;  %v194_v15 = vld [vmem:[%s951_s2] sm:$0xff]  ;;  %v403_v17 = vld [vmem:[%s950_s1 + $0x48] sm:$0xff]  ;;  %vm356_vm1 = vcmask 261120  }
  0x15   : > { %s784_s28 = scalar_lea.vmem %s949_s0, %s525_s25  ;;  %231 = vperm.xlu0 %624, %v197_v5   ;;  %626 = vset.pattern.permute.xlu2 %v711_v7  ;;  %v335_v19 = vld [vmem:[%s951_s2 + $0x38] sm:$0xff]  ;;  %v406_v21 = vld [vmem:[%s951_s2 + $0x40] sm:$0x1]  ;;  %v404_v23 = vld [vmem:[%s950_s1 + $0x50] sm:$0xff]  ;;  %s661_s25 = sshra.s32 %s466_s20, 4  ;;  %s662_s25 = int_to_ptr.hbm [resolvable:$true] %s661_s25 }
  0x16   : > { %v213_v0 = vld [vmem:[%s784_s28 + $0x78] sm:$0xff]  ;;  %v212_v1 = vld [vmem:[%s784_s28 + $0x70] sm:$0xff]  ;;  %v211_v2 = vld [vmem:[%s784_s28 + $0x68] sm:$0xff]  ;;  %221 = vperm.xlu1 %625, %v195_v11   ;;  %s663_s26 = scalar_lea.hbm %s662_s25, 1  ;;  %p668_p0 = scmp.lt.s32.totalorder %s662_s25, %s952_s3 }
  0x17   : > { %553 = vmatpush.xpose.msk.msra.mxu3 %vm234_vm0, %v213_v0  ;;  %552 = vmatpush.xpose.msk.msra.mxu2 %vm234_vm0, %v213_v0  ;;  %v210_v3 = vld [vmem:[%s784_s28 + $0x60] sm:$0xff]  ;;  %v209_v4 = vld [vmem:[%s784_s28 + $0x58] sm:$0xff]  ;;  %v208_v6 = vld [vmem:[%s784_s28 + $0x50] sm:$0xff]  ;;  %p664_p11 = scmp.ne.s32.totalorder %s662_s25, %s663_s26  ;;  %p669_p1 = scmp.lt.s32.totalorder %s667_s16, %s663_s26 }
  0x18   : > { %526 = vmatpush.xpose.msk.msra.mxu0 %vm234_vm0, %v213_v0  ;;  %v207_v8 = vld [vmem:[%s784_s28 + $0x48] sm:$0xff]  ;;  %v206_v10 = vld [vmem:[%s784_s28 + $0x40] sm:$0xff]  ;;  %v205_v12 = vld [vmem:[%s784_s28 + $0x38] sm:$0xff] }
  0x19   : > { %v204_v14 = vld [vmem:[%s784_s28 + $0x30] sm:$0xff]  ;;  %v203_v16 = vld [vmem:[%s784_s28 + $0x28] sm:$0xff]  ;;  %v202_v18 = vld [vmem:[%s784_s28 + $0x20] sm:$0xff]  ;;  %p665_p12 = pnand %p664_p11, %p770_p5  ;;  %p670_p2 = por %p669_p1, %p668_p0 }
  0x1a   : > { %v201_v20 = vld [vmem:[%s784_s28 + $0x18] sm:$0xff]  ;;  %v200_v22 = vld [vmem:[%s784_s28 + $0x10] sm:$0xff]  ;;  %v199_v24 = vld [vmem:[%s784_s28 + $0x8] sm:$0xff] }
  0x1b   : > { %555 = vmatpush.xpose.msk.msra.mxu3 %vm234_vm0, %v212_v1  ;;  %554 = vmatpush.xpose.msk.msra.mxu2 %vm234_vm0, %v212_v1  ;;  %v198_v25 = vld [vmem:[%s784_s28] sm:$0xff]  ;;  %v192_v26 = vld [vmem:[%s950_s1 + $0x10] sm:$0xff]  ;;  %v191_v27 = vld [vmem:[%s950_s1 + $0x8] sm:$0xff]  ;;  %s174_s28 = sand.u32 1, %s701_s13   ;;  %p666_p13 = pneg %p665_p12 }
  0x1c   : > { %527 = vmatpush.xpose.msk.msra.mxu0 %vm234_vm0, %v212_v1  ;;  %v190_v28 = vld [vmem:[%s950_s1] sm:$0xff]  ;;  %v193_v29 = vld [vmem:[%s950_s1 + $0x18] sm:$0xff]  ;;  %v333_v44 = vld [vmem:[%s951_s2 + $0x28] sm:$0xff]  ;;  %s175_s17 = scalar_lea.vmem [#allocation2], %s174_s28  ;;  %s453_s24 = scalar_lea.sflag [#allocation3], %s174_s28 }
  0x1d   : > { %226 = vperm.xlu0 %624, %v196_v9   ;;  %v332_v38 = vld [vmem:[%s951_s2 + $0x20] sm:$0xff]  ;;  %v329_v50 = vld [vmem:[%s950_s1 + $0x28] sm:$0xff]  ;;  %v405_v51 = vld [vmem:[%s950_s1 + $0x58] sm:$0xff]  ;;  %s463_s19 = sshll.u32 %s175_s17, 4  ;;  %p671_p3 = pnand %p670_p2, %p666_p13  ;;  %s464_s19 = int_to_ptr.vmem [resolvable:$true] %s463_s19 }
  0x1e   : > { %216 = vperm.xlu1 %625, %v194_v15   ;;  %338 = vperm.xlu2 %626, %v332_v38   ;;  %v328_v47 = vld [vmem:[%s950_s1 + $0x20] sm:$0xff]  ;;  %v330_v52 = vld [vmem:[%s950_s1 + $0x30] sm:$0xff]  ;;  %v331_v53 = vld [vmem:[%s950_s1 + $0x38] sm:$0xff] }
  0x1f   : > { %557 = vmatpush.xpose.msk.msra.mxu3 %vm234_vm0, %v211_v2  ;;  %556 = vmatpush.xpose.msk.msra.mxu2 %vm234_vm0, %v211_v2  ;;  %v402_v49 = vld [vmem:[%s950_s1 + $0x40] sm:$0xff] }
  0x20   : > { %528 = vmatpush.xpose.msk.msra.mxu0 %vm234_vm0, %v211_v2 }
  0x23   : > { %559 = vmatpush.xpose.msk.msra.mxu3 %vm234_vm0, %v210_v3  ;;  %558 = vmatpush.xpose.msk.msra.mxu2 %vm234_vm0, %v210_v3 }
  0x24   : > { %529 = vmatpush.xpose.msk.msra.mxu0 %vm234_vm0, %v210_v3 }
  0x25   : > { %348 = vperm.xlu0 %624, %v334_v13  }
  0x26   : > { %353 = vperm.xlu1 %625, %v335_v19   ;;  %343 = vperm.xlu2 %626, %v333_v44  }
  0x27   : > { %561 = vmatpush.xpose.msk.msra.mxu3 %vm234_vm0, %v209_v4  ;;  %560 = vmatpush.xpose.msk.msra.mxu2 %vm234_vm0, %v209_v4 }
  0x28   : > { %530 = vmatpush.xpose.msk.msra.mxu0 %vm234_vm0, %v209_v4 }
  0x2b   : > { %563 = vmatpush.xpose.msk.msra.mxu3 %vm234_vm0, %v208_v6  ;;  %562 = vmatpush.xpose.msk.msra.mxu2 %vm234_vm0, %v208_v6 }
  0x2c   : > { %531 = vmatpush.xpose.msk.msra.mxu0 %vm234_vm0, %v208_v6 }
  0x2d   : > { %414 = vperm.xlu0 %624, %v403_v17  }
  0x2e   : > { %419 = vperm.xlu1 %625, %v404_v23   ;;  %409 = vperm.xlu2 %626, %v402_v49  }
  0x2f   : > { %565 = vmatpush.xpose.msk.msra.mxu3 %vm234_vm0, %v207_v8  ;;  %564 = vmatpush.xpose.msk.msra.mxu2 %vm234_vm0, %v207_v8 }
  0x30   : > { %532 = vmatpush.xpose.msk.msra.mxu0 %vm234_vm0, %v207_v8 }
  0x33   : > { %567 = vmatpush.xpose.msk.msra.mxu3 %vm234_vm0, %v206_v10  ;;  %566 = vmatpush.xpose.msk.msra.mxu2 %vm234_vm0, %v206_v10 }
  0x34   : > { %533 = vmatpush.xpose.msk.msra.mxu0 %vm234_vm0, %v206_v10 }
  0x35   : > { %442 = vperm.xlu0 %624, %v406_v21  }
  0x36   : > { %424 = vperm.xlu2 %626, %v405_v51  }
  0x37   : > { %569 = vmatpush.xpose.msk.msra.mxu3 %vm234_vm0, %v205_v12  ;;  %568 = vmatpush.xpose.msk.msra.mxu2 %vm234_vm0, %v205_v12 }
  0x38   : > { %534 = vmatpush.xpose.msk.msra.mxu0 %vm234_vm0, %v205_v12 }
  0x3b   : > { %571 = vmatpush.xpose.msk.msra.mxu3 %vm234_vm0, %v204_v14  ;;  %570 = vmatpush.xpose.msk.msra.mxu2 %vm234_vm0, %v204_v14 }
  0x3c   : > { %535 = vmatpush.xpose.msk.msra.mxu0 %vm234_vm0, %v204_v14 }
  0x3f   : > { %573 = vmatpush.xpose.msk.msra.mxu3 %vm234_vm0, %v203_v16  ;;  %572 = vmatpush.xpose.msk.msra.mxu2 %vm234_vm0, %v203_v16 }
  0x40   : > { %536 = vmatpush.xpose.msk.msra.mxu0 %vm234_vm0, %v203_v16 }
  0x43   : > { %575 = vmatpush.xpose.msk.msra.mxu3 %vm234_vm0, %v202_v18  ;;  %574 = vmatpush.xpose.msk.msra.mxu2 %vm234_vm0, %v202_v18 }
  0x44   : > { %537 = vmatpush.xpose.msk.msra.mxu0 %vm234_vm0, %v202_v18 }
  0x47   : > { %577 = vmatpush.xpose.msk.msra.mxu3 %vm234_vm0, %v201_v20  ;;  %576 = vmatpush.xpose.msk.msra.mxu2 %vm234_vm0, %v201_v20 }
  0x48   : > { %538 = vmatpush.xpose.msk.msra.mxu0 %vm234_vm0, %v201_v20 }
  0x4b   : > { %579 = vmatpush.xpose.msk.msra.mxu3 %vm234_vm0, %v200_v22  ;;  %578 = vmatpush.xpose.msk.msra.mxu2 %vm234_vm0, %v200_v22 }
  0x4c   : > { %539 = vmatpush.xpose.msk.msra.mxu0 %vm234_vm0, %v200_v22 }
  0x4f   : > { %581 = vmatpush.xpose.msk.msra.mxu3 %vm234_vm0, %v199_v24  ;;  %580 = vmatpush.xpose.msk.msra.mxu2 %vm234_vm0, %v199_v24 }
  0x50   : > { %540 = vmatpush.xpose.msk.msra.mxu0 %vm234_vm0, %v199_v24 }
  0x53   : > { %583 = vmatpush.xpose.msk.msra.mxu3 %vm234_vm0, %v198_v25  ;;  %582 = vmatpush.xpose.msk.msra.mxu2 %vm234_vm0, %v198_v25 }
  0x54   : > { %541 = vmatpush.xpose.msk.msra.mxu0 %vm234_vm0, %v198_v25 }
  0x56   : > { %544 = vmatmul.msk.f32.vlgmr.msra.gmra.mxu3 %vm234_vm0, %v192_v26  ;;  %543 = vmatmul.msk.f32.vlgmr.msra.gmra.mxu2 %vm234_vm0, %v191_v27 }
  0x57   : > { %542 = vmatmul.msk.f32.vlgmr.msra.gmra.mxu0 %vm234_vm0, %v190_v28 }
  0x5e   : > { %545 = vmatmul.msk.f32.gmra.mxu3 %vm234_vm0, %v193_v29 }
  0x78   : > { %v339_v55 = vpop.permute.xlu2 %338 }
  0x80   : > { %v344_v57 = vpop.permute.xlu2 %343 }
  0x87   : > { %v232_v30 = vpop.permute.xlu0 %231 }
  0x88   : > { %v222_v32 = vpop.permute.xlu1 %221  ;;  %v410_v0 = vpop.permute.xlu2 %409 }
  0x8f   : > { %v227_v33 = vpop.permute.xlu0 %226 }
  0x90   : > { %v217_v41 = vpop.permute.xlu1 %216  ;;  %v425_v13 = vpop.permute.xlu2 %424 }
  0x97   : > { %v349_v59 = vpop.permute.xlu0 %348 }
  0x98   : > { %v354_v63 = vpop.permute.xlu1 %353 }
  0x9f   : > { %v415_v6 = vpop.permute.xlu0 %414 }
  0xa0   : > { %v420_v8 = vpop.permute.xlu1 %419 }
  0xa7   : > { %v443_v23 = vpop.permute.xlu0 %442 }
  0xd4   : > { %v312_v39 = vpop.f32.mrf.mxu0 }
  0xd5   : > { %v313_v42 = vadd.f32 %v312_v39, %v217_v41 }
  0xd9   : > { %v318_v31 = vpop.f32.mrf.mxu3  ;;  %v315_v34 = vpop.f32.mrf.mxu2 }
  0xda   : > { %v319_v36 = vadd.f32 %v318_v31, %v227_v33  ;;  %v316_v40 = vadd.f32 %v315_v34, %v222_v32 }
  0xe1   : > { %v321_v35 = vpop.f32.mrf.mxu3 }
  0xe2   : > { %v322_v37 = vadd.f32 %v321_v35, %v232_v30 }
  0xe4   : > { %627 = vtanh.f32 %v322_v37 }
  0xe5   : > { %629 = vtanh.f32 %v319_v36 }
  0xe6   : > { %631 = vtanh.f32 %v316_v40 }
  0xe7   : > { %633 = vtanh.f32 %v313_v42 }
  0xea   : > { %v628_v43 = vpop.eup %627 }
  0xeb   : > { %381 = vmatpush.msra.mxu1 %v628_v43  ;;  %v630_v45 = vpop.eup %629 }
  0xec   : > { %v632_v46 = vpop.eup %631 }
  0xed   : > { %382 = vmatpush.msra.mxu1 %v630_v45  ;;  %v634_v48 = vpop.eup %633 }
  0xef   : > { %383 = vmatpush.msra.mxu1 %v632_v46 }
  0xf1   : > { %384 = vmatpush.msra.mxu1 %v634_v48 }
  0xf2   : > { %546 = vmatmul.msk.f32.vlgmr.msra.gmra.mxu1 %vm356_vm1, %v328_v47 }
  0xfa   : > { %547 = vmatmul.msk.f32.gmra.mxu1 %vm356_vm1, %v329_v50 }
 0x102   : > { %548 = vmatmul.msk.f32.gmra.mxu1 %vm356_vm1, %v330_v52 }
 0x10a   : > { %549 = vmatmul.msk.f32.gmra.mxu1 %vm356_vm1, %v331_v53 }
 0x16f   : > { %v386_v54 = vpop.f32.mrf.mxu1 }
 0x170   : > { %v387_v60 = vadd.f32 %v386_v54, %v339_v55 }
 0x177   : > { %v389_v56 = vpop.f32.mrf.mxu1 }
 0x178   : > { %v390_v58 = vadd.f32 %v389_v56, %v344_v57 }
 0x17a   : > { %635 = vtanh.f32 %v390_v58 }
 0x17b   : > { %637 = vtanh.f32 %v387_v60 }
 0x17f   : > { %v392_v61 = vpop.f32.mrf.mxu1 }
 0x180   : > { %v393_v62 = vadd.f32 %v392_v61, %v349_v59  ;;  %v636_v2 = vpop.eup %635 }
 0x181   : > { %v638_v4 = vpop.eup %637  ;;  %v428_v7 = vmul.f32 %v636_v2, %v415_v6 }
 0x182   : > { %639 = vtanh.f32 %v393_v62  ;;  %v427_v9 = vmul.f32 %v638_v4, %v410_v0 }
 0x184   : > { %v431_v11 = vadd.f32 %v428_v7, %v427_v9 }
 0x187   : > { %v395_v1 = vpop.f32.mrf.mxu1 }
 0x188   : > { %v396_v3 = vadd.f32 %v395_v1, %v354_v63  ;;  %v640_v5 = vpop.eup %639 }
 0x189   : > { %v429_v10 = vmul.f32 %v640_v5, %v420_v8 }
 0x18a   : > { %641 = vtanh.f32 %v396_v3 }
 0x18b   : > { %v432_v14 = vadd.f32 %v431_v11, %v429_v10 }
 0x190   : > { %v642_v12 = vpop.eup %641 }
 0x191   : > { %v430_v15 = vmul.f32 %v642_v12, %v425_v13 }
 0x193   : > { %v433_v16 = vadd.f32 %v432_v14, %v430_v15 }
 0x195   : > { %v434_v17 = vrot.slane %v433_v16, 4 }
 0x197   : > { %v435_v18 = vadd.f32 %v434_v17, %v433_v16 }
 0x199   : > { %v436_v19 = vrot.slane %v435_v18, 2 }
 0x19b   : > { %v437_v20 = vadd.f32 %v436_v19, %v435_v18 }
 0x19d   : > { %v438_v21 = vrot.slane %v437_v20, 1 }
 0x19f   : > { %v439_v22 = vadd.f32 %v438_v21, %v437_v20 }
 0x1a1   : > { %v445_v24 = vadd.f32 %v443_v23, %v439_v22 }
 0x1a3   : > { %v446_v25 = vmul.f32 1.442695, %v445_v24 }
 0x1a5   : > { %643 = vpow2.f32 %v446_v25 }
 0x1ab   : > { %v644_v26 = vpop.eup %643 }
 0x1ac   : > { %v448_v27 = vadd.f32 1.0, %v644_v26 }
 0x1ae   : > { %645 = vlog2.f32 %v448_v27 }
 0x1b4   : > { %v646_v28 = vpop.eup %645 }
 0x1b5   : > { %v450_v29 = vmul.f32 0.6931472, %v646_v28 }
 0x1b7   : > { %451 = vst [vmem:[%s175_s17] sm:$0x1] %v450_v29 }
 0x1b8   : > { %674 = shalt.err (!%p671_p3)
}
 0x1b9   : > { %584 = dma.vmem_to_hbm [thread:$0]  (%p770_p5), %s464_s19, 16, %s466_s20, %s453_s24  }
 0x1ba PF: > { %p590_p4 = scmp.ge.s32.totalorder %s709_s15, 2  ;;  %s477_s5 = sand.u32 1, %s697_s12  }
 0x1bb   : > { %s478_s6 = scalar_lea.sflag [#allocation3], %s477_s5 }
 0x1bc   : > { %p587_p7 = pnand %p590_p4, %p774_p6 }
 0x1be   : > { %p588_p8 = pneg %p587_p7 }
 0x1c0   : > { %692 = dma.done.wait (%p588_p8), %s478_s6, 16  }
 0x1c1   : > { %694 = vsyncadd (%p588_p8), %s478_s6, 4294967280  ;;  %p13_p9 = scmp.ge.s32.totalorder %s757_s18, 4   ;;  %s955_s12 = smov %s701_s13 }
 0x1c2   : > { %s956_s13 = smov %s705_s14  ;;  %s957_s14 = smov %s768_s21 }
 0x1c3   : > { %s958_s15 = smov %s757_s18  ;;  %15 = sbr.rel (!%p13_p9) target bundleno = 3 (0x3), region = 67 }
 0x1c8   :  { %483 = vsyncpa [#allocation3], 1 }
 0x1c9   :  { %485 = vsyncpa [#allocation3 + $0x1], 1 }

</bundles_post_ra>
